<compile_context>
chip_gen: v7x
topology: tpu7x:2x2x1
jax: 0.10.0
libtpu: 0.0.40
codegen_flags: <defaults>
</compile_context>

<pallas_src>
import functools
import math

import jax
import jax.numpy as jnp
from jax.experimental import pallas as pl
from jax.experimental.pallas import tpu as pltpu


def _eca3d_kernel(taps_ref, x_ref, o_ref, acc_ref, *, inv_s, k, tail_valid):
    # taps_ref:   SMEM (k,) f32   effective 1-D conv taps
    # x_ref:      VMEM (1, C, TILE_S) block of the flattened input (native dtype)
    # o_ref:      VMEM (1, 1, C) f32 output block (sigmoid(channel attention))
    # acc_ref:    VMEM (1, C) f32   running spatial sum (accumulator)
    # tail_valid: static number of valid lanes in the LAST S tile
    s = pl.program_id(1)
    num_s = pl.num_programs(1)
    tile_s = x_ref.shape[-1]

    @pl.when(s == 0)
    def _init():
        acc_ref[...] = jnp.zeros_like(acc_ref)

    if tail_valid == tile_s:
        # S divides evenly into tiles: plain unmasked lane-axis reduction.
        acc_ref[...] += jnp.sum(x_ref[...], axis=-1, dtype=jnp.float32)
    else:
        # Mask only the (single) partial tail tile; full tiles stay unmasked.
        @pl.when(s < num_s - 1)
        def _full_tile():
            acc_ref[...] += jnp.sum(x_ref[...], axis=-1, dtype=jnp.float32)

        @pl.when(s == num_s - 1)
        def _tail_tile():
            tile = x_ref[...].astype(jnp.float32)
            lane = jax.lax.broadcasted_iota(jnp.int32, tile.shape, dimension=2)
            acc_ref[...] += jnp.sum(
                jnp.where(lane < tail_valid, tile, 0.0), axis=-1)

    # Finalize: mean -> k-tap zero-padded channel conv -> sigmoid -> single store.
    @pl.when(s == num_s - 1)
    def _finalize():
        pooled = acc_ref[...] * inv_s                        # (1, C) f32
        C = pooled.shape[-1]
        p = (k - 1) // 2
        conv = taps_ref[p] * pooled                          # centre tap (d == 0)
        for j in range(k):                                   # k is tiny & static
            d = j - p                                        # out[c] += taps[j] * pooled[c + d]
            if d == 0 or abs(d) >= C:
                continue
            if d > 0:
                shifted = jnp.concatenate(
                    [pooled[:, d:], jnp.zeros((1, d), jnp.float32)], axis=-1)
            else:
                shifted = jnp.concatenate(
                    [jnp.zeros((1, -d), jnp.float32), pooled[:, :d]], axis=-1)
            conv = conv + taps_ref[j] * shifted
        o_ref[0] = jax.nn.sigmoid(conv)


def eca3d_forward(x, conv_weight, *, tile_s=None):
    """x: (B, C, D, H, W); conv_weight: (1, 1, k, k, k). Returns (B, C, 1, 1, 1)."""
    B, C, D, H, W = x.shape
    k = conv_weight.shape[-1]
    p = (k - 1) // 2
    S = D * H * W

    # Only the centre (kh=p, kw=p) slice of the 3-D kernel multiplies real data.
    taps = conv_weight[0, 0, :, p, p].astype(jnp.float32)    # (k,)

    # Keep the native dtype: the Pallas DMA moves exactly the input bytes.
    xs = x.reshape(B, C, S)

    # Pick the S tile: a multiple of 128 lanes, ~4 MiB per in-flight buffer
    # (~8 MiB double-buffered) -> fits every chip's VMEM with headroom and is
    # large enough to hold ~85% of HBM bandwidth on v5e/v6e.
    itemsize = jnp.dtype(x.dtype).itemsize
    if S <= 128:
        tile_s = S                                           # full-extent block
    else:
        if tile_s is None:
            budget = 4 * 1024 * 1024                         # bytes per x buffer
            tile_s = budget // max(1, C * itemsize)
        tile_s = max(128, (int(tile_s) // 128) * 128)
        tile_s = min(tile_s, (S // 128) * 128)
    num_s = pl.cdiv(S, tile_s)
    tail_valid = S - (num_s - 1) * tile_s                    # lanes valid in last tile

    kernel = functools.partial(
        _eca3d_kernel, inv_s=1.0 / S, k=k, tail_valid=tail_valid)

    out = pl.pallas_call(
        kernel,
        out_shape=jax.ShapeDtypeStruct((B, 1, C), jnp.float32),
        grid=(B, num_s),
        in_specs=[
            # k conv taps: tiny, scalar-read, resident in SMEM for all steps.
            pl.BlockSpec(memory_space=pltpu.MemorySpace.SMEM),
            # x tile: (1, C, TILE_S); C equals the full dim, TILE_S is a
            # multiple of 128 (or the full S) -> (8, 128)-legal blocks.
            pl.BlockSpec((1, C, tile_s), lambda bb, ss: (bb, 0, ss)),
        ],
        # Output block index is constant along the S (reduction) axis: the
        # single tiny store only happens in the finalize step.
        out_specs=pl.BlockSpec((1, 1, C), lambda bb, ss: (bb, 0, 0)),
        scratch_shapes=[pltpu.VMEM((1, C), jnp.float32)],
        compiler_params=pltpu.CompilerParams(
            # B is independent -> "parallel" (megacore); S is the accumulated
            # reduction axis -> "arbitrary", kept last.
            dimension_semantics=("parallel", "arbitrary"),
            # Above the default scoped limit but safely below v7x's 64 MiB.
            vmem_limit_bytes=48 * 1024 * 1024,
        ),
    )(taps, xs)

    return out.reshape(B, C, 1, 1, 1)


def _reference(x, conv_weight):
    """Pure-JAX reference of the effective forward (avg-pool -> channel conv -> sigmoid)."""
    B, C = x.shape[0], x.shape[1]
    k = conv_weight.shape[-1]
    p = (k - 1) // 2
    pooled = x.astype(jnp.float32).mean(axis=(2, 3, 4))      # (B, C)
    taps = conv_weight[0, 0, :, p, p].astype(jnp.float32)
    padded = jnp.pad(pooled, ((0, 0), (p, p)))
    conv = jnp.stack(
        [jnp.sum(padded[:, c:c + k] * taps, axis=-1) for c in range(C)], axis=-1)
    return jax.nn.sigmoid(conv).reshape(B, C, 1, 1, 1)


if __name__ == "__main__":
    key = jax.random.PRNGKey(0)

    # --- Test 1: small shapes; D*H*W = 210 (not a multiple of 128) so the
    # multi-tile reduction, accumulator init/finalize and the (tail-only)
    # lane mask are all exercised.
    B, C, D, H, W = 2, 8, 5, 6, 7
    gamma, b = 2, 1
    k = int(abs((math.log(C, 2) + b) / gamma))               # module __init__ formula
    k = k if k % 2 else k + 1

    kx, kw, kx2, kw2 = jax.random.split(key, 4)
    x = jax.random.normal(kx, (B, C, D, H, W), dtype=jnp.float32)
    bound = 1.0 / math.sqrt(1 * k * k * k)                   # Conv3d default init bound
    conv_weight = jax.random.uniform(
        kw, (1, 1, k, k, k), minval=-bound, maxval=bound, dtype=jnp.float32)

    out = jax.block_until_ready(eca3d_forward(x, conv_weight))
    assert out.shape == (B, C, 1, 1, 1)
    ref = _reference(x, conv_weight)
    assert jnp.allclose(out, ref, atol=1e-5, rtol=1e-5)

    # --- Test 2: S = 4096 (multiple of 128); force tile_s=512 to exercise the
    # multi-step unmasked accumulation path.
    B2, C2, D2, H2, W2 = 1, 16, 16, 16, 16
    k2 = int(abs((math.log(C2, 2) + b) / gamma))
    k2 = k2 if k2 % 2 else k2 + 1
    x2 = jax.random.normal(kx2, (B2, C2, D2, H2, W2), dtype=jnp.float32)
    bound2 = 1.0 / math.sqrt(1 * k2 * k2 * k2)
    conv_weight2 = jax.random.uniform(
        kw2, (1, 1, k2, k2, k2), minval=-bound2, maxval=bound2, dtype=jnp.float32)

    out2 = jax.block_until_ready(eca3d_forward(x2, conv_weight2, tile_s=512))
    ref2 = _reference(x2, conv_weight2)
    assert out2.shape == (B2, C2, 1, 1, 1)
    assert jnp.allclose(out2, ref2, atol=1e-5, rtol=1e-5)

    print("KERNEL_OK")
</pallas_src>

<mosaic_0001>
module attributes {stable_mosaic.version = 11 : i64} {
  func.func @_eca3d_kernel(%arg0: i32, %arg1: i32, %arg2: memref<3xf32, #tpu.memory_space<smem>>, %arg3: memref<1x8x128xf32, #tpu.memory_space<vmem>>, %arg4: memref<1x1x8xf32, #tpu.memory_space<vmem>>, %arg5: memref<1x8xf32, #tpu.memory_space<vmem>>) attributes {dimension_semantics = [#tpu.dimension_semantics<parallel>, #tpu.dimension_semantics<arbitrary>], iteration_bounds = array<i64: 2, 2>, scalar_prefetch = 0 : i64, scratch_operands = 1 : i64, tpu.core_type = #tpu.core_type<tc>, window_params = [{transform_indices = @transform_0, window_bounds = array<i64: 3>}, {transform_indices = @transform_1, window_bounds = array<i64: 1, 8, 128>}, {transform_indices = @transform_2, window_bounds = array<i64: 1, 1, 8>}]} {
    %c0_i32 = arith.constant 0 : i32
    %0 = arith.cmpi eq, %arg1, %c0_i32 : i32
    %1 = arith.extui %0 : i1 to i32
    %c0_i32_0 = arith.constant 0 : i32
    %2 = arith.cmpi ne, %1, %c0_i32_0 : i32
    scf.if %2 {
      %cst = arith.constant 0.000000e+00 : f32
      %12 = vector.broadcast %cst : f32 to vector<1x8xf32>
      %c0 = arith.constant 0 : index
      %c0_6 = arith.constant 0 : index
      %13 = vector.load %arg5[%c0, %c0_6] : memref<1x8xf32, #tpu.memory_space<vmem>>, vector<1x8xf32>
      tpu.vector_store %arg5[%c0, %c0_6], %12 {strides = array<i32>} : memref<1x8xf32, #tpu.memory_space<vmem>>, vector<1x8xf32>,
    } else {
    }
    %c1_i32 = arith.constant 1 : i32
    %3 = arith.cmpi slt, %arg1, %c1_i32 : i32
    %4 = arith.extui %3 : i1 to i32
    %c0_i32_1 = arith.constant 0 : i32
    %5 = arith.cmpi ne, %4, %c0_i32_1 : i32
    scf.if %5 {
      %c0 = arith.constant 0 : index
      %c0_6 = arith.constant 0 : index
      %12 = vector.load %arg5[%c0, %c0_6] : memref<1x8xf32, #tpu.memory_space<vmem>>, vector<1x8xf32>
      %c0_7 = arith.constant 0 : index
      %c0_8 = arith.constant 0 : index
      %c0_9 = arith.constant 0 : index
      %13 = vector.load %arg3[%c0_7, %c0_8, %c0_9] : memref<1x8x128xf32, #tpu.memory_space<vmem>>, vector<1x8x128xf32>
      %cst = arith.constant dense<0.000000e+00> : vector<1x8xf32>
      %14 = vector.multi_reduction <add>, %13, %cst [2] : vector<1x8x128xf32> to vector<1x8xf32>
      %15 = arith.addf %12, %14 : vector<1x8xf32>
      %c0_10 = arith.constant 0 : index
      %c0_11 = arith.constant 0 : index
      %16 = vector.load %arg5[%c0_10, %c0_11] : memref<1x8xf32, #tpu.memory_space<vmem>>, vector<1x8xf32>
      tpu.vector_store %arg5[%c0_10, %c0_11], %15 {strides = array<i32>} : memref<1x8xf32, #tpu.memory_space<vmem>>, vector<1x8xf32>,
    } else {
    }
    %c1_i32_2 = arith.constant 1 : i32
    %6 = arith.cmpi eq, %arg1, %c1_i32_2 : i32
    %7 = arith.extui %6 : i1 to i32
    %c0_i32_3 = arith.constant 0 : i32
    %8 = arith.cmpi ne, %7, %c0_i32_3 : i32
    scf.if %8 {
      %c0 = arith.constant 0 : index
      %c0_6 = arith.constant 0 : index
      %c0_7 = arith.constant 0 : index
      %12 = vector.load %arg3[%c0, %c0_6, %c0_7] : memref<1x8x128xf32, #tpu.memory_space<vmem>>, vector<1x8x128xf32>
      %13 = tpu.iota {dimensions = array<i32: 2>} : vector<1x8x128xi32>
      %c0_8 = arith.constant 0 : index
      %c0_9 = arith.constant 0 : index
      %14 = vector.load %arg5[%c0_8, %c0_9] : memref<1x8xf32, #tpu.memory_space<vmem>>, vector<1x8xf32>
      %c82_i32 = arith.constant 82 : i32
      %15 = vector.broadcast %c82_i32 : i32 to vector<1x8x128xi32>
      %16 = arith.cmpi slt, %13, %15 : vector<1x8x128xi32>
      %cst = arith.constant 0.000000e+00 : f32
      %17 = vector.broadcast %cst : f32 to vector<1x8x128xf32>
      %18 = arith.select %16, %12, %17 : vector<1x8x128xi1>, vector<1x8x128xf32>
      %cst_10 = arith.constant dense<0.000000e+00> : vector<1x8xf32>
      %19 = vector.multi_reduction <add>, %18, %cst_10 [2] : vector<1x8x128xf32> to vector<1x8xf32>
      %20 = arith.addf %14, %19 : vector<1x8xf32>
      %c0_11 = arith.constant 0 : index
      %c0_12 = arith.constant 0 : index
      %21 = vector.load %arg5[%c0_11, %c0_12] : memref<1x8xf32, #tpu.memory_space<vmem>>, vector<1x8xf32>
      tpu.vector_store %arg5[%c0_11, %c0_12], %20 {strides = array<i32>} : memref<1x8xf32, #tpu.memory_space<vmem>>, vector<1x8xf32>,
    } else {
    }
    %c1_i32_4 = arith.constant 1 : i32
    %9 = arith.cmpi eq, %arg1, %c1_i32_4 : i32
    %10 = arith.extui %9 : i1 to i32
    %c0_i32_5 = arith.constant 0 : i32
    %11 = arith.cmpi ne, %10, %c0_i32_5 : i32
    scf.if %11 {
      %c0 = arith.constant 0 : index
      %c0_6 = arith.constant 0 : index
      %12 = vector.load %arg5[%c0, %c0_6] : memref<1x8xf32, #tpu.memory_space<vmem>>, vector<1x8xf32>
      %cst = arith.constant 0.00476190494 : f32
      %13 = vector.broadcast %cst : f32 to vector<1x8xf32>
      %14 = arith.mulf %12, %13 : vector<1x8xf32>
      %c1 = arith.constant 1 : index
      %15 = memref.load %arg2[%c1] : memref<3xf32, #tpu.memory_space<smem>>
      %16 = vector.broadcast %15 : f32 to vector<1x8xf32>
      %17 = arith.mulf %16, %14 : vector<1x8xf32>
      %cst_7 = arith.constant 0.000000e+00 : f32
      %18 = vector.broadcast %cst_7 : f32 to vector<1x1xf32>
      %19 = vector.extract_strided_slice %14 {offsets = [0, 0], sizes = [1, 7], strides = [1, 1]} : vector<1x8xf32> to vector<1x7xf32>
      %20 = tpu.concatenate %18, %19 in 1 : vector<1x1xf32>, vector<1x7xf32> -> vector<1x8xf32>
      %c0_8 = arith.constant 0 : index
      %21 = memref.load %arg2[%c0_8] : memref<3xf32, #tpu.memory_space<smem>>
      %22 = vector.broadcast %21 : f32 to vector<1x8xf32>
      %23 = arith.mulf %22, %20 : vector<1x8xf32>
      %24 = arith.addf %17, %23 : vector<1x8xf32>
      %25 = vector.extract_strided_slice %14 {offsets = [0, 1], sizes = [1, 7], strides = [1, 1]} : vector<1x8xf32> to vector<1x7xf32>
      %cst_9 = arith.constant 0.000000e+00 : f32
      %26 = vector.broadcast %cst_9 : f32 to vector<1x1xf32>
      %27 = tpu.concatenate %25, %26 in 1 : vector<1x7xf32>, vector<1x1xf32> -> vector<1x8xf32>
      %c2 = arith.constant 2 : index
      %28 = memref.load %arg2[%c2] : memref<3xf32, #tpu.memory_space<smem>>
      %29 = vector.broadcast %28 : f32 to vector<1x8xf32>
      %30 = arith.mulf %29, %27 : vector<1x8xf32>
      %31 = arith.addf %24, %30 : vector<1x8xf32>
      %32 = arith.negf %31 : vector<1x8xf32>
      %33 = math.exp %32 : vector<1x8xf32>
      %cst_10 = arith.constant 1.000000e+00 : f32
      %34 = vector.broadcast %cst_10 : f32 to vector<1x8xf32>
      %35 = arith.addf %34, %33 : vector<1x8xf32>
      %36 = arith.divf %34, %35 : vector<1x8xf32>
      %c0_11 = arith.constant 0 : index
      %c0_12 = arith.constant 0 : index
      %c0_13 = arith.constant 0 : index
      %37 = vector.load %arg4[%c0_11, %c0_12, %c0_13] : memref<1x1x8xf32, #tpu.memory_space<vmem>>, vector<1x1x8xf32>
      %38 = vector.shape_cast %37 : vector<1x1x8xf32> to vector<1x8xf32>
      %39 = vector.shape_cast %36 : vector<1x8xf32> to vector<1x1x8xf32>
      tpu.vector_store %arg4[%c0_11, %c0_12, %c0_13], %39 {strides = array<i32>} : memref<1x1x8xf32, #tpu.memory_space<vmem>>, vector<1x1x8xf32>,
    } else {
    }
    return
  }
  func.func @transform_0(%arg0: i32, %arg1: i32) -> i32 {
    %c0_i32 = arith.constant 0 : i32
    %c0_i32_0 = arith.constant 0 : i32
    return %c0_i32 : i32
  }
  func.func @transform_1(%arg0: i32, %arg1: i32) -> (i32, i32, i32) {
    %c0_i32 = arith.constant 0 : i32
    %c0_i32_0 = arith.constant 0 : i32
    return %arg0, %c0_i32, %arg1 : i32, i32, i32
  }
  func.func @transform_2(%arg0: i32, %arg1: i32) -> (i32, i32, i32) {
    %c0_i32 = arith.constant 0 : i32
    %c0_i32_0 = arith.constant 0 : i32
    %c0_i32_1 = arith.constant 0 : i32
    return %arg0, %c0_i32, %c0_i32_0 : i32, i32, i32
  }
}

</mosaic_0001>

<bundles_post_ra>
// kernel: tpu_custom_call.1
= control target key start
LH: loop header
LB: loop body
LE: loop exit
PB: predicated region body
PF: predicated region fallthrough
CT: control target
= control target key end

     0   :  { %s1173_s0 = inlined_call_operand.hbm [shape: f32[3], index: 0, kind: input, shape index: {}]   ;;  %s1174_s1 = inlined_call_operand.hbm [shape: f32[2,8,210], index: 1, kind: input, shape index: {}]   ;;  %s1175_s2 = inlined_call_operand.hbm [shape: f32[2,1,8], index: 2, kind: output, shape index: {}]  }
   0x1   :  { %1187 = sst [smem:[#allocation17_spill]] %s1173_s0 }
   0x2   :  { %1188 = sst [smem:[#allocation18_spill]] %s1175_s2 }
   0x3   :  { %7 = vsyncpa [#allocation6], 0 }
   0x4   :  { %8 = vsyncpa [#allocation4], 0 }
   0x5   :  { %10 = vsyncpa [#allocation4 + $0x1], 0 }
   0x6   :  { %11 = vsyncpa [#allocation5], 0 }
   0x7   :  { %13 = vsyncpa [#allocation5 + $0x1], 0  ;;  %s909_s9 = smov 0   ;;  %s911_s10 = smov 0  }
   0x8   :  { %s913_s11 = smov 0   ;;  %s915_s12 = smov 0  }
   0x9   :  { %s917_s13 = smov 0   ;;  %s919_s14 = smov 0  }
   0xa   :  { %s921_s15 = smov 0   ;;  %s923_s16 = smov 0  }
   0xb   :  { %s925_s17 = smov 0   ;;  %s927_s18 = smov 0  }
   0xc   :  { %s929_s19 = smov 0  }
   0xd LB: > { %1189 = sst [smem:[#allocation12_spill]] %s842_s9  ;;  %s567_s20 = sadd.s32 4294967295, %s882_s19   ;;  %s882_s19 = sphi %s929_s19, %s19_s19   ;;  %s878_s18 = sphi %s927_s18, %s1221_s18   ;;  %s874_s17 = sphi %s925_s17, %s1220_s17   ;;  %s870_s16 = sphi %s923_s16, %s1219_s16   ;;  %s866_s15 = sphi %s921_s15, %s1218_s15   ;;  %s862_s14 = sphi %s919_s14, %s1217_s14   ;;  %s858_s13 = sphi %s917_s13, %s1216_s13   ;;  %s854_s12 = sphi %s915_s12, %s1215_s12   ;;  %s850_s11 = sphi %s913_s11, %s1214_s11   ;;  %s846_s10 = sphi %s911_s10, %s1213_s10   ;;  %s842_s9 = sphi %s909_s9, %s1212_s9  }
   0xe   : > { %s568_s21 = sadd.s32 4294967294, %s882_s19   ;;  %p74_p0 = scmp.ne.s32.totalorder %s858_s13, %s854_s12 }
   0xf   : > { %p965_p1 = scmp.eq.s32.totalorder %s567_s20, 0  ;;  %s87_s23 = sadd.s32 1, %s850_s11 }
  0x10   : > { %p97_p2 = scmp.ne.s32.totalorder %s850_s11, %s846_s10  ;;  %p98_p4 = scmp.eq.s32.totalorder %s567_s20, 3 }
  0x11   : > { %s1190_s22 = scalar_select %p965_p1, 1, 0 }
  0x12   : > { %p974_p3 = por %p965_p1, %p74_p0  ;;  %p103_p5 = scmp.ne.s32.totalorder %s846_s10, %s842_s9 }
  0x13   : > { %p104_p6 = scmp.eq.s32.totalorder %s568_s21, 3  ;;  %p980_p7 = por %p98_p4, %p97_p2 }
  0x14   : > { %s1191_s24 = scalar_select %p974_p3, 1, 0 }
  0x15   : > { %s1192_s25 = scalar_select %p980_p7, 1, 0 }
  0x16   : > { %p569_p8 = scmp.ge.s32.totalorder %s882_s19, 1  ;;  %p985_p9 = por %p104_p6, %p103_p5 }
  0x17   : > { %1193 = sst [smem:[#allocation13_spill]] %s1192_s25  ;;  %p111_p10 = scmp.lt.s32.totalorder %s882_s19, 5 }
  0x18   : > { %s1194_s26 = scalar_select %p985_p9, 1, 0 }
  0x19   : > { %p990_p11 = pnand %p569_p8, %p111_p10  ;;  %s28_s28 = sadd.s32 1, %s874_s17 }
  0x1a   : > { %1195 = sst [smem:[#allocation14_spill]] %s1194_s26  ;;  %s31_s29 = sadd.s32 1, %s878_s18 }
  0x1b   : > { %p595_p12 = pneg %p990_p11  ;;  %p29_p0 = scmp.ge.s32.totalorder %s28_s28, 2 }
  0x1c   : > { %s1197_s0 = sld [smem:[#allocation17_spill]] }
  0x1d   : > { %p596_p13 = pnand %p595_p12, %p965_p1 }
  0x1f   : > { %p715_p4 = pneg %p596_p13 }
  0x22   : > { %s713_s4 = scalar_lea.hbm %s1197_s0, 16 }
  0x23   : > { %p714_p2 = scmp.ne.s32.totalorder %s1197_s0, %s713_s4  ;;  %p720_p8 = scmp.lt.u32.totalorder %s713_s4, %s1197_s0 }
  0x25   : > { %p716_p5 = pnand %p715_p4, %p714_p2 }
  0x27   : > { %p717_p6 = pneg %p716_p5 }
  0x29   : > { %p722_p10 = pnand %p720_p8, %p717_p6 }
  0x2b   : > { %725 = shalt.err (!%p722_p10)
}
  0x2c   : > { %s884_s12 = smov [#allocation3]   ;;  %s1223_s28 = smov (%p29_p0, %s28_s28), 0 }
  0x2d   : > { %598 = dma.hbm_to_smem (!%p596_p13), %s1197_s0, 16, %s884_s12, [#allocation6]  }
  0x2e   : > { %1198 = sst [smem:[#allocation15_spill]] %s1223_s28  ;;  %s1225_s29 = smov (!%p29_p0, %s31_s29), %s878_s18 }
  0x2f   : > { %s57_s30 = ssub.s32 %s874_s17, %s1223_s28  ;;  %s61_s3 = sadd.s32 1, %s862_s14 }
  0x30   : > { %p33_p12 = scmp.ge.s32.totalorder %s1225_s29, 2  ;;  %p68_p2 = scmp.ne.s32.totalorder %s862_s14, %s858_s13 }
  0x31   : > { %p69_p4 = scmp.eq.s32.totalorder %s882_s19, 0  ;;  %p608_p5 = scmp.lt.s32.totalorder %s882_s19, 4 }
  0x32   : > { %s1227_s29 = smov (%p33_p12, %s1225_s29), 0  ;;  %s133_s5 = sand.u32 1, %s862_s14  }
  0x33   : > { %1199 = sst [smem:[#allocation16_spill]] %s1227_s29  ;;  %p1024_p6 = por %p69_p4, %p68_p2 }
  0x34   : > { %s56_s6 = ssub.s32 %s878_s18, %s1227_s29  ;;  %s572_s8 = sshll.u32 %s133_s5, 3 }
  0x35   : > { %s58_s7 = sor.u32 %s57_s30, %s56_s6  ;;  %p85_p13 = scmp.eq.s32.totalorder %s56_s6, 0 }
  0x36   : > { %p59_p0 = scmp.eq.s32.totalorder %s58_s7, 0  ;;  %s573_s21 = sshll.u32 %s878_s18, 1 }
  0x37   : > { %s1034_s12 = scalar_select %p85_p13, %s850_s11, %s87_s23  }
  0x38   : > { %s1037_s20 = scalar_select %p59_p0, %s862_s14, %s61_s3  }
  0x39   : > { %s142_s0 = sadd.s32 %s874_s17, %s573_s21  ;;  %s137_s28 = scalar_lea.vmem [#allocation7], %s572_s8 }
  0x3a   : > { %s146_s26 = sshll.u32 %s137_s28, 4  ;;  %s574_s9 = sshll.u32 %s142_s0, 7  ;;  %s1041_s26 = int_to_ptr.vmem [resolvable:$true] %s146_s26 }
  0x3b   : > { %s1046_s29 = scalar_lea.hbm %s1174_s1, %s574_s9  ;;  %p1052_p8 = pnand %p608_p5, %p1024_p6 }
  0x3c   : > { %s134_s0 = scalar_lea.sflag [#allocation4], %s133_s5  ;;  %s726_s28 = scalar_lea.hbm %s1046_s29, 128 }
  0x3d   : > { %p727_p10 = scmp.ne.s32.totalorder %s1046_s29, %s726_s28  ;;  %p728_p12 = pneg %p1052_p8 }
  0x3e   : > { %s731_s25 = scalar_lea.hbm %s1174_s1, 512  ;;  %p732_p5 = scmp.lt.u32.totalorder %s1046_s29, %s1174_s1 }
  0x3f   : > { %p729_p2 = pnand %p728_p12, %p727_p10  ;;  %p733_p6 = scmp.lt.u32.totalorder %s731_s25, %s726_s28 }
  0x40   : > { %p735_p0 = scmp.lt.u32.totalorder %s726_s28, %s1046_s29 }
  0x41   : > { %p730_p4 = pneg %p729_p2  ;;  %p734_p13 = por %p733_p6, %p732_p5 }
  0x43   : > { %p736_p9 = por %p735_p0, %p734_p13 }
  0x45   : > { %p737_p7 = pnand %p736_p9, %p730_p4 }
  0x47   : > { %740 = shalt.err (!%p737_p7)
}
  0x48   : > { %s741_s4 = scalar_lea.vmem %s1041_s26, 128  ;;  %s885_s5 = smov [#allocation7]  }
  0x49   : > { %p742_p10 = scmp.ne.s32.totalorder %s1041_s26, %s741_s4  ;;  %s746_s6 = sshll.u32 %s885_s5, 4  ;;  %s747_s6 = int_to_ptr.vmem [resolvable:$false] %s746_s6 }
  0x4a   : > { %s748_s7 = scalar_lea.vmem %s747_s6, 256  ;;  %p749_p1 = scmp.lt.s32.totalorder %s1041_s26, %s747_s6 }
  0x4b   : > { %p744_p2 = pnand %p742_p10, %p728_p12  ;;  %p750_p5 = scmp.lt.s32.totalorder %s748_s7, %s741_s4 }
  0x4d   : > { %p745_p3 = pneg %p744_p2  ;;  %p751_p6 = por %p750_p5, %p749_p1 }
  0x4f   : > { %p752_p13 = pnand %p751_p6, %p745_p3 }
  0x51   : > { %755 = shalt.err (!%p752_p13)
}
  0x52   : > { %602 = dma.hbm_to_vmem [thread:$0]  (!%p1052_p8), %s1046_s29, 128, %s1041_s26, %s134_s0  }
  0x53   : > { %155 = sbr.rel (%p990_p11) target bundleno = 888 (0x378), region = 28  ;;  %p1202_p7 = scmp.ne.s32.totalorder (!%p990_p11), %s1190_s22, 0 }
  0x5a   : > { %829 = dma.done.wait (%p1202_p7), [#allocation6], 16  }
  0x5b   : > { %831 = vsyncadd (%p1202_p7), [#allocation6], 4294967280  ;;  %s161_s8 = sand.u32 1, %s858_s13   ;;  %p1203_p1 = scmp.ne.s32.totalorder %s1191_s24, 0 }
  0x5c   : > { %s1088_s21 = sshll.u32 %s161_s8, 3  ;;  %s162_s28 = scalar_lea.sflag [#allocation4], %s161_s8 }
  0x5d   : > { %s165_s23 = scalar_lea.vmem [#allocation7], %s1088_s21 }
  0x5e   : > { %833 = dma.done.wait (%p1203_p1), %s162_s28, 128  }
  0x5f   : > { %835 = vsyncadd (%p1203_p1), %s162_s28, 4294967168 }
  0x60   : > { %170 = sfence }
  0x61   : > { %s184_s26 = sand.u32 1, %s846_s10   ;;  %p578_p3 = scmp.ne.s32.totalorder %s866_s15, 0 }
  0x62   : > { %s1098_s22 = scalar_lea.vmem [#allocation8], %s184_s26  ;;  %vm190_vm0 = vcmask (!%p578_p3), 57344   ;;  %v886_v0 = vmov (!%p578_p3), 0.0  }
  0x63   : > { %189 = sbr.rel (%p578_p3) target bundleno = 106 (0x6a), region = 40  ;;  %191 = vst.msk [vmem:[#allocation2] sm:$0x1] (!%p578_p3), %vm190_vm0, %v886_v0 }
  0x6a PF: > { %p579_p9 = scmp.ge.s32.totalorder %s866_s15, 1 }
  0x6b   : > { %v197_v1 = vld [vmem:[%s165_s23] sm:$0xff] (!%p579_p9)  ;;  %v887_v2 = vmov (!%p579_p9), 0   ;;  %v201_v3 = vlaneseq (!%p579_p9)  ;;  %v888_v7 = vmov (!%p579_p9), 1966171168   ;;  %v196_v44 = vld [vmem:[#allocation2] sm:$0x1] (!%p579_p9) }
  0x6c   : > { %195 = sbr.rel (%p579_p9) target bundleno = 400 (0x190), region = 44  ;;  %198 = vadd.xlane.f32.xlu0 (!%p579_p9), %v197_v1  ;;  %v238_v8 = vunpack.c.l.s4 (!%p579_p9), %v888_v7  ;;  %vm307_vm1 = vcmask (!%p579_p9), 57344  }
  0x6d   : > { %707 = vset.pattern.permute.xlu0 (!%p579_p9), %v887_v2  ;;  %v202_v4 = vshrl.u32 (!%p579_p9), %v201_v3, 7  ;;  %v286_v5 = vand.u32 (!%p579_p9), 127, %v201_v3 }
  0x6e   : > { %v239_v9 = vunpack.c.0.s8 (!%p579_p9), %v238_v8 }
  0x6f   : > { %v289_v6 = vsub.s32 (!%p579_p9), %v286_v5, %v202_v4  ;;  %v203_v10 = vsub.s32 (!%p579_p9), 0, %v202_v4  ;;  %v207_v11 = vsub.s32 (!%p579_p9), 1, %v202_v4  ;;  %v211_v12 = vsub.s32 (!%p579_p9), 2, %v202_v4 }
  0x70   : > { %v215_v13 = vsub.s32 (!%p579_p9), 3, %v202_v4  ;;  %v219_v14 = vsub.s32 (!%p579_p9), 4, %v202_v4  ;;  %v223_v15 = vsub.s32 (!%p579_p9), 5, %v202_v4  ;;  %v227_v16 = vsub.s32 (!%p579_p9), 6, %v202_v4 }
  0x71   : > { %v231_v17 = vsub.s32 (!%p579_p9), 7, %v202_v4  ;;  %v242_v19 = vsub.s32 (!%p579_p9), %v239_v9, %v202_v4 }
  0xf9   : > { %v199_v18 = vpop.xlane.xlu0 %198 }
  0xfa   : > { %v204_v20 = vrot.slane %v199_v18, %v203_v10  ;;  %v208_v21 = vrot.slane %v199_v18, %v207_v11  ;;  %v212_v22 = vrot.slane %v199_v18, %v211_v12  ;;  %v216_v23 = vrot.slane %v199_v18, %v215_v13 }
  0xfb   : > { %v220_v24 = vrot.slane %v199_v18, %v219_v14  ;;  %v224_v25 = vrot.slane %v199_v18, %v223_v15  ;;  %v228_v26 = vrot.slane %v199_v18, %v227_v16  ;;  %v232_v27 = vrot.slane %v199_v18, %v231_v17 }
  0xfc   : > { %v233_v28 = vcombine.low %v204_v20, %v208_v21  ;;  %v234_v29 = vcombine.low %v212_v22, %v216_v23 }
  0xfd   : > { %v235_v30 = vcombine.low %v220_v24, %v224_v25  ;;  %v236_v31 = vcombine.low %v228_v26, %v232_v27 }
  0xfe   : > { %v243_v32 = vrot.slane %v233_v28, %v242_v19  ;;  %v250_v33 = vrot.slane %v234_v29, %v242_v19 }
  0xff   : > { %v257_v34 = vrot.slane %v235_v30, %v242_v19  ;;  %v264_v35 = vrot.slane %v236_v31, %v242_v19 }
 0x100   : > { %v265_v36 = vcombine.low %v243_v32, %v250_v33 }
 0x101   : > { %v266_v37 = vcombine.low %v257_v34, %v264_v35 }
 0x102   : > { %v273_v38 = vrot.slane %v265_v36, %v242_v19 }
 0x103   : > { %v280_v39 = vrot.slane %v266_v37, %v242_v19 }
 0x105   : > { %v281_v40 = vcombine.low %v273_v38, %v280_v39 }
 0x107   : > { %283 = vperm.xlu0 %707, %v281_v40  }
 0x186   : > { %v284_v41 = vpop.permute.xlu0 %283 }
 0x187   : > { %v290_v42 = vrot.slane %v284_v41, %v289_v6 }
 0x189   : > { %v297_v43 = vrot.slane %v290_v42, %v242_v19 }
 0x18b   : > { %v304_v45 = vrot.slane %v297_v43, %v242_v19 }
 0x18d   : > { %v306_v46 = vadd.f32 %v304_v45, %v196_v44 }
 0x18f   : > { %308 = vst.msk [vmem:[#allocation2] sm:$0x1] %vm307_vm1, %v306_v46 }
 0x190 PF: > { %p580_p11 = scmp.ne.s32.totalorder %s866_s15, 1 }
 0x191   : > { %v314_v47 = vlaneseq (!%p580_p11)  ;;  %v313_v48 = vld [vmem:[%s165_s23] sm:$0xff] (!%p580_p11)  ;;  %v889_v51 = vmov (!%p580_p11), 0   ;;  %v890_v54 = vmov (!%p580_p11), 1966171168   ;;  %vm426_vm3 = vcmask (!%p580_p11), 57344   ;;  %s891_s15 = smov (!%p580_p11), 1  }
 0x192   : > { %312 = sbr.rel (%p580_p11) target bundleno = 861 (0x35d), region = 48  ;;  %708 = vset.pattern.permute.xlu0 (!%p580_p11), %v889_v51  ;;  %v359_v55 = vunpack.c.l.s4 (!%p580_p11), %v890_v54  ;;  %s892_s24 = smov (!%p580_p11), 127   ;;  %vm441_vm4 = vcmask (!%p580_p11), 7168   ;;  %vm450_vm5 = vcmask (!%p580_p11), 56320  }
 0x193   : > { %v315_v49 = vand.u32 (!%p580_p11), 127, %v314_v47  ;;  %v323_v52 = vshrl.u32 (!%p580_p11), %v314_v47, 7  ;;  %s443_s27 = sld [smem:[#allocation3]] (!%p580_p11)  ;;  %s581_s29 = sld [smem:[#allocation3 + $0x1]] (!%p580_p11) }
 0x194   : > { %v360_v56 = vunpack.c.0.s8 (!%p580_p11), %v359_v55  ;;  %s582_s0 = sld [smem:[#allocation3 + $0x2]] (!%p580_p11) }
 0x195   : > { %vm317_vm2 = vcmp.lt.s32.totalorder (!%p580_p11), %v315_v49, 82  ;;  %v408_v53 = vsub.s32 (!%p580_p11), %v315_v49, %v323_v52  ;;  %v324_v57 = vsub.s32 (!%p580_p11), 0, %v323_v52  ;;  %v328_v58 = vsub.s32 (!%p580_p11), 1, %v323_v52 }
 0x196   : > { %v318_v50 = vsel (!%p580_p11), %vm317_vm2, %v313_v48, 0.0  ;;  %v332_v59 = vsub.s32 (!%p580_p11), 2, %v323_v52  ;;  %v336_v60 = vsub.s32 (!%p580_p11), 3, %v323_v52  ;;  %v340_v61 = vsub.s32 (!%p580_p11), 4, %v323_v52  ;;  %v316_v27 = vld [vmem:[#allocation2] sm:$0x1] (!%p580_p11) }
 0x197   : > { %319 = vadd.xlane.f32.xlu0 (!%p580_p11), %v318_v50  ;;  %v344_v62 = vsub.s32 (!%p580_p11), 5, %v323_v52  ;;  %v348_v63 = vsub.s32 (!%p580_p11), 6, %v323_v52  ;;  %v352_v0 = vsub.s32 (!%p580_p11), 7, %v323_v52  ;;  %v363_v2 = vsub.s32 (!%p580_p11), %v360_v56, %v323_v52 }
 0x199   : > { %v444_v33 = vstv %s443_s27  ;;  %v431_v35 = vstv %s581_s29 }
 0x19a   : > { %v453_v38 = vstv %s582_s0 }
 0x224   : > { %v320_v1 = vpop.xlane.xlu0 %319 }
 0x225   : > { %v325_v3 = vrot.slane %v320_v1, %v324_v57  ;;  %v329_v4 = vrot.slane %v320_v1, %v328_v58  ;;  %v333_v5 = vrot.slane %v320_v1, %v332_v59  ;;  %v337_v6 = vrot.slane %v320_v1, %v336_v60 }
 0x226   : > { %v341_v7 = vrot.slane %v320_v1, %v340_v61  ;;  %v345_v8 = vrot.slane %v320_v1, %v344_v62  ;;  %v349_v9 = vrot.slane %v320_v1, %v348_v63  ;;  %v353_v10 = vrot.slane %v320_v1, %v352_v0 }
 0x227   : > { %v354_v11 = vcombine.low %v325_v3, %v329_v4  ;;  %v355_v12 = vcombine.low %v333_v5, %v337_v6 }
 0x228   : > { %v356_v13 = vcombine.low %v341_v7, %v345_v8  ;;  %v357_v14 = vcombine.low %v349_v9, %v353_v10 }
 0x229   : > { %v364_v15 = vrot.slane %v354_v11, %v363_v2  ;;  %v371_v16 = vrot.slane %v355_v12, %v363_v2 }
 0x22a   : > { %v378_v17 = vrot.slane %v356_v13, %v363_v2  ;;  %v385_v18 = vrot.slane %v357_v14, %v363_v2 }
 0x22b   : > { %v386_v19 = vcombine.low %v364_v15, %v371_v16 }
 0x22c   : > { %v387_v20 = vcombine.low %v378_v17, %v385_v18 }
 0x22d   : > { %v394_v21 = vrot.slane %v386_v19, %v363_v2 }
 0x22e   : > { %v401_v22 = vrot.slane %v387_v20, %v363_v2 }
 0x230   : > { %v402_v23 = vcombine.low %v394_v21, %v401_v22 }
 0x232   : > { %404 = vperm.xlu0 %708, %v402_v23  }
 0x2b1   : > { %v405_v24 = vpop.permute.xlu0 %404 }
 0x2b2   : > { %v409_v25 = vrot.slane %v405_v24, %v408_v53 }
 0x2b4   : > { %v416_v26 = vrot.slane %v409_v25, %v363_v2 }
 0x2b6   : > { %v423_v28 = vrot.slane %v416_v26, %v363_v2 }
 0x2b8   : > { %v425_v29 = vadd.f32 %v423_v28, %v316_v27 }
 0x2ba   : > { %427 = vst.msk [vmem:[#allocation2] sm:$0x1] %vm426_vm3, %v425_v29 }
 0x2c1   : > { %v428_v30 = vld [vmem:[#allocation2] sm:$0x1] }
 0x2c2   : > { %v429_v31 = vmul.f32 0.004761905, %v428_v30 }
 0x2c4   : > { %v437_v32 = vrot.slane %v429_v31, %v324_v57  ;;  %v432_v39 = vmul.f32 %v431_v35, %v429_v31 }
 0x2c6   : > { %438 = vrot.lane.b32.xlu1 %v437_v32, %s891_s15 }
 0x2ca   : > { %447 = vrot.lane.b32.xlu1 %v437_v32, %s892_s24 }
 0x338   : > { %v439_v34 = vpop.permute.xlu1 %438 }
 0x339   : > { %v442_v36 = vsel %vm441_vm4, 0.0, %v439_v34 }
 0x33a   : > { %v445_v37 = vmul.f32 %v444_v33, %v442_v36 }
 0x33c   : > { %v448_v40 = vpop.permute.xlu1 %447  ;;  %v446_v42 = vadd.f32 %v445_v37, %v432_v39 }
 0x33d   : > { %v451_v41 = vsel %vm450_vm5, %v448_v40, 0.0 }
 0x33e   : > { %v454_v43 = vmul.f32 %v453_v38, %v451_v41 }
 0x340   : > { %v455_v44 = vadd.f32 %v454_v43, %v446_v42 }
 0x342   : > { %v583_v45 = vmul.f32 -1.442695, %v455_v44 }
 0x344   : > { %709 = vpow2.f32 %v583_v45 }
 0x34e   : > { %v710_v46 = vpop.eup %709 }
 0x34f   : > { %v459_v47 = vadd.f32 1.0, %v710_v46 }
 0x351   : > { %711 = vrcp.f32 %v459_v47 }
 0x35b   : > { %v712_v48 = vpop.eup %711 }
 0x35c   : > { %462 = vst.msk [vmem:[%s1098_s22] sm:$0x1] %vm426_vm3, %v712_v48 }
 0x35d PF: > { %s1204_s2 = sld [smem:[#allocation13_spill]]  ;;  %s584_s9 = sshll.u32 %s870_s16, 4 }
 0x35e   : > { %s1205_s3 = sld [smem:[#allocation18_spill]]  ;;  %s476_s5 = sshll.u32 %s1098_s22, 4  ;;  %s477_s5 = int_to_ptr.vmem [resolvable:$true] %s476_s5 }
 0x35f   : > { %s464_s6 = scalar_lea.sflag [#allocation5], %s184_s26  ;;  %s756_s7 = scalar_lea.vmem %s477_s5, 16 }
 0x360   : > { %p757_p8 = scmp.ne.s32.totalorder %s477_s5, %s756_s7  ;;  %s893_s8 = smov [#allocation8]  }
 0x361   : > { %s760_s21 = sshll.u32 %s893_s8, 4  ;;  %s761_s21 = int_to_ptr.vmem [resolvable:$false] %s760_s21 }
 0x362   : > { %s762_s28 = scalar_lea.vmem %s761_s21, 32  ;;  %p763_p10 = scmp.lt.s32.totalorder %s477_s5, %s761_s21 }
 0x363   : > { %p1206_p12 = scmp.ne.s32.totalorder %s1204_s2, 0  ;;  %p764_p2 = scmp.lt.s32.totalorder %s762_s28, %s756_s7 }
 0x364   : > { %s1114_s4 = scalar_lea.hbm %s1205_s3, %s584_s9 }
 0x365   : > { %p758_p4 = pnand %p757_p8, %p1206_p12  ;;  %p765_p5 = por %p764_p2, %p763_p10 }
 0x367   : > { %p759_p0 = pneg %p758_p4 }
 0x369   : > { %p766_p6 = pnand %p765_p5, %p759_p0 }
 0x36b   : > { %769 = shalt.err (!%p766_p6)
}
 0x36c   : > { %s770_s16 = scalar_lea.hbm %s1114_s4, 16  ;;  %s774_s22 = scalar_lea.hbm %s1205_s3, 32 }
 0x36d   : > { %p771_p13 = scmp.ne.s32.totalorder %s1114_s4, %s770_s16  ;;  %p775_p3 = scmp.lt.u32.totalorder %s1114_s4, %s1205_s3 }
 0x36e   : > { %p776_p9 = scmp.lt.u32.totalorder %s774_s22, %s770_s16  ;;  %p778_p8 = scmp.lt.u32.totalorder %s770_s16, %s1114_s4 }
 0x36f   : > { %p772_p7 = pnand %p771_p13, %p1206_p12 }
 0x370   : > { %p777_p11 = por %p776_p9, %p775_p3 }
 0x371   : > { %p773_p1 = pneg %p772_p7 }
 0x372   : > { %p779_p4 = por %p778_p8, %p777_p11 }
 0x374   : > { %p780_p0 = pnand %p779_p4, %p773_p1 }
 0x376   : > { %783 = shalt.err (!%p780_p0)
}
 0x377   : > { %593 = dma.vmem_to_hbm [thread:$0]  (%p1206_p12), %s477_s5, 16, %s1114_s4, %s464_s6  }
 0x378 PF: > { %s1207_s27 = sld [smem:[#allocation12_spill]]  ;;  %s1208_s29 = sld [smem:[#allocation14_spill]] }
 0x379   : > { %p610_p10 = scmp.ge.s32.totalorder %s882_s19, 2 }
 0x37e   : > { %s488_s0 = sand.u32 1, %s1207_s27   ;;  %p1209_p2 = scmp.ne.s32.totalorder %s1208_s29, 0 }
 0x37f   : > { %s489_s9 = scalar_lea.sflag [#allocation5], %s488_s0 }
 0x380   : > { %p604_p5 = pnand %p610_p10, %p1209_p2 }
 0x382   : > { %837 = dma.done.wait (!%p604_p5), %s489_s9, 16  }
 0x383   : > { %839 = vsyncadd (!%p604_p5), %s489_s9, 4294967280  ;;  %s19_s19 = sadd.s32 1, %s882_s19   ;;  %s1210_s2 = sld [smem:[#allocation15_spill]] }
 0x384   : > { %p16_p6 = scmp.ge.s32.totalorder %s19_s19, 6   ;;  %s1211_s25 = sld [smem:[#allocation16_spill]] }
 0x385   : > { %s1212_s9 = smov %s846_s10  ;;  %s1213_s10 = smov %s850_s11 }
 0x386   : > { %s1214_s11 = smov %s1034_s12  ;;  %s1215_s12 = smov %s858_s13 }
 0x387   : > { %s1216_s13 = smov %s862_s14  ;;  %s1217_s14 = smov %s1037_s20 }
 0x388   : > { %s1218_s15 = smov %s874_s17  ;;  %s1219_s16 = smov %s878_s18 }
 0x389   : > { %s1220_s17 = smov %s1210_s2  ;;  %18 = sbr.rel (!%p16_p6) target bundleno = 13 (0xd), region = 90 }
 0x38a   : > { %s1221_s18 = smov %s1211_s25 }
 0x390   :  { %493 = vsyncpa [#allocation4], 1 }
 0x391   :  { %495 = vsyncpa [#allocation4 + $0x1], 1 }
 0x392   :  { %496 = vsyncpa [#allocation5], 1 }
 0x393   :  { %498 = vsyncpa [#allocation5 + $0x1], 1 }
 0x394   :  { %499 = vsyncpa [#allocation6], 1 }
 0x395   :  { %501 = vsyncpa [#allocation6 + $0x1], 1 }

</bundles_post_ra>
